<compile_context>
chip_gen: v7x
topology: tpu7x:2x2x1
jax: 0.10.0
libtpu: 0.0.40
codegen_flags: <defaults>
</compile_context>

<pallas_src>
import functools

import jax
import jax.numpy as jnp
from jax import lax
from jax.experimental import pallas as pl
from jax.experimental.pallas import tpu as pltpu


def _remap_ids(ids, lengths, *, num_embeddings, e_is_pow2):
    """ManagedCollision remap (id % E) fused with the jagged-length mask.

    Padded slots become -1 and never match the one-hot iota.
    """
    pos = lax.broadcasted_iota(jnp.int32, ids.shape, 2)            # (F, Bt, L)
    if e_is_pow2:
        rem = jnp.bitwise_and(ids, num_embeddings - 1)
    else:
        rem = ids % num_embeddings
    return jnp.where(pos < lengths, rem, -1)                       # (F, Bt, L)


def _mc_ebc_kernel(ids_ref, len_ref, tbl_ref, out_ref, rid_ref, *,
                   num_embeddings, e_tile, n_e_tiles, e_is_pow2):
    # Block views (grid = (B_tiles, E_tiles)):
    #   ids_ref : (F, Bt, L)   int32   resident across the E loop
    #   len_ref : (F, Bt, 1)   int32   resident across the E loop
    #   tbl_ref : (F, Et, D)   f32/bf16
    #   out_ref : (Bt, F*D)    f32     lane-dense, resident E-loop accumulator
    #   rid_ref : (F, Bt, L)   int32   VMEM scratch (remap hoisted out of E loop)
    e_idx = pl.program_id(1)

    if n_e_tiles > 1:
        @pl.when(e_idx == 0)
        def _():
            rid_ref[...] = _remap_ids(ids_ref[...], len_ref[...],
                                      num_embeddings=num_embeddings,
                                      e_is_pow2=e_is_pow2)
        rid = rid_ref[...]
    else:
        rid = _remap_ids(ids_ref[...], len_ref[...],
                         num_embeddings=num_embeddings, e_is_pow2=e_is_pow2)

    num_features, bt, seq_len = rid.shape
    et = tbl_ref.shape[1]

    # One (Bt, Et) iota per grid step, offset into this E tile.
    e_iota = lax.broadcasted_iota(jnp.int32, (bt, et), 1)
    if n_e_tiles > 1:
        e_iota = e_iota + e_idx * e_tile

    partials = []
    for f in range(num_features):
        rid_f = rid[f]                                             # (Bt, L)
        # Per-bag histogram for this E tile, accumulated with a loop over L
        # so the live intermediate is a single (Bt, Et) tile (no 3-D temp).
        counts = jnp.zeros((bt, et), jnp.float32)
        if seq_len <= 64:
            for l in range(seq_len):                               # static unroll
                counts = counts + (rid_f[:, l:l + 1] == e_iota).astype(jnp.float32)
        else:
            def body(l, c):
                col = lax.dynamic_slice_in_dim(rid_f, l, 1, axis=1)
                return c + (col == e_iota).astype(jnp.float32)
            counts = lax.fori_loop(0, seq_len, body, counts)

        tbl_f = tbl_ref[f]                                         # (Et, D)
        partials.append(jnp.dot(counts.astype(tbl_f.dtype), tbl_f,
                                preferred_element_type=jnp.float32))

    # Assemble the full lane-dense (Bt, F*D) row -> single unmasked store/RMW.
    row = partials[0] if len(partials) == 1 else jnp.concatenate(partials, axis=1)
    row = row.astype(out_ref.dtype)

    if n_e_tiles == 1:
        out_ref[...] = row
    else:
        @pl.when(e_idx == 0)
        def _():
            out_ref[...] = row

        @pl.when(e_idx > 0)
        def _():
            out_ref[...] = out_ref[...] + row


def _round_up(x, m):
    return ((x + m - 1) // m) * m


def _vmem_budget_bytes():
    """~85% of this generation's physical VMEM (64 MiB v7x, 128 MiB v5e/v6e)."""
    try:
        cap = pltpu.get_tpu_info().vmem_capacity_bytes
    except Exception:
        cap = 64 << 20   # assume the smallest (v7x) if the query fails
    return int(0.85 * cap)


def _choose_tiles(num_features, batch, seq_len, num_emb, emb_dim,
                  tbl_itemsize, budget):
    """Pick (b_tile, e_tile) that fit the per-generation VMEM budget."""
    def fits(bt, et):
        ids_b = 2 * num_features * bt * seq_len * 4        # double-buffered
        len_b = 2 * num_features * bt * 4
        tbl_b = 2 * num_features * et * emb_dim * tbl_itemsize
        out_b = 2 * bt * num_features * emb_dim * 4
        rid_b = num_features * bt * seq_len * 4             # scratch
        tmp_b = 3 * bt * et * 4                              # counts + temps
        return ids_b + len_b + tbl_b + out_b + rid_b + tmp_b <= budget

    # b_tile: biggest first (<=256, multiple of 8), sized so there are >= 2
    # parallel B tiles when B allows (v7x has 2 TensorCores).
    bt_max = min(_round_up(batch, 8), 256)
    if batch >= 16:
        bt_max = min(bt_max, _round_up((batch + 1) // 2, 8))
    bt_cands = [bt_max] + [c for c in (128, 64, 32, 16, 8) if c < bt_max]

    # e_tile: whole table first (ne == 1 -> (E, D) block DMA'd once and
    # VMEM-resident across all B tiles), else lane-friendly multiples of 128.
    et_cands = [num_emb] + [c for c in (4096, 2048, 1024, 512, 256, 128)
                            if c < num_emb]

    for et in et_cands:
        for bt in bt_cands:
            if fits(bt, et):
                return bt, et
    return 8, 128


def mc_ebc_forward(values, lengths, tables, *, b_tile=None, e_tile=None,
                   table_dtype=None):
    """Pallas forward of ManagedCollisionEmbeddingBagCollection.

    values:  int32[F, B, L]     padded jagged ids (raw, pre-remap)
    lengths: int32[F, B, 1]     valid lengths per (feature, sample)
    tables:  float[F, E, D]     embedding tables (one per feature/table)
    returns: float32[B, F*D]    KeyedTensor dense values (feature-major concat)
    """
    F, B, L = values.shape
    Ft, E, D = tables.shape
    assert Ft == F, "one table per feature expected"

    if table_dtype is not None:
        # bf16 tables halve table DMA bytes and hit the native bf16 MXU rate;
        # integer bag counts are exact in bf16, accumulation stays f32.
        tables = tables.astype(table_dtype)

    budget = _vmem_budget_bytes()
    auto_bt, auto_et = _choose_tiles(F, B, L, E, D, tables.dtype.itemsize, budget)
    if b_tile is None:
        b_tile = auto_bt
    if e_tile is None:
        e_tile = auto_et

    nb = pl.cdiv(B, b_tile)
    ne = pl.cdiv(E, e_tile)
    Bp, Ep = nb * b_tile, ne * e_tile

    if Bp != B:   # padded bags have length 0 -> contribute zeros, sliced off
        values = jnp.pad(values, ((0, 0), (0, Bp - B), (0, 0)))
        lengths = jnp.pad(lengths, ((0, 0), (0, Bp - B), (0, 0)))
    if Ep != E:   # remap stays % E, so padded table rows are never selected
        tables = jnp.pad(tables, ((0, 0), (0, Ep - E), (0, 0)))

    e_is_pow2 = E > 0 and (E & (E - 1)) == 0
    kernel = functools.partial(
        _mc_ebc_kernel, num_embeddings=E, e_tile=e_tile, n_e_tiles=ne,
        e_is_pow2=e_is_pow2)

    # Table is re-streamed once per B tile when the E axis is tiled.
    tbl_stream = int(tables.nbytes) * (nb if ne > 1 else 1)
    io_bytes = int(values.nbytes) + int(lengths.nbytes) + tbl_stream \
        + Bp * F * D * 4

    out = pl.pallas_call(
        kernel,
        out_shape=jax.ShapeDtypeStruct((Bp, F * D), jnp.float32),
        grid_spec=pltpu.PrefetchScalarGridSpec(
            num_scalar_prefetch=0,
            grid=(nb, ne),
            in_specs=[
                # ids / lengths: constant across the E reduction axis.
                pl.BlockSpec((F, b_tile, L), lambda b, e: (0, b, 0)),
                pl.BlockSpec((F, b_tile, 1), lambda b, e: (0, b, 0)),
                # table tile: independent of b -> DMA'd once when ne == 1.
                pl.BlockSpec((F, e_tile, D), lambda b, e: (0, e, 0)),
            ],
            # Lane-dense output block; index constant across e -> resident
            # f32 accumulator of the E-reduction loop.
            out_specs=pl.BlockSpec((b_tile, F * D), lambda b, e: (b, 0)),
            scratch_shapes=[pltpu.VMEM((F, b_tile, L), jnp.int32)],
        ),
        compiler_params=pltpu.CompilerParams(
            dimension_semantics=("parallel", "arbitrary"),
            vmem_limit_bytes=budget,
        ),
        cost_estimate=pl.CostEstimate(
            flops=int(2 * F * Bp * Ep * D),
            transcendentals=0,
            bytes_accessed=int(io_bytes),
        ),
    )(values, lengths, tables)

    if Bp != B:
        out = out[:B]
    return out


def ref_forward(values, lengths, tables):
    """Pure-JAX reference (same math, no Pallas)."""
    F, B, L = values.shape
    E = tables.shape[1]
    rid = values % E
    pos = jnp.arange(L)[None, None, :]
    mask = (pos < lengths).astype(jnp.float32)                     # (F, B, L)
    onehot = jax.nn.one_hot(rid, E, dtype=jnp.float32)             # (F, B, L, E)
    counts = jnp.sum(onehot * mask[..., None], axis=2)             # (F, B, E)
    pooled = jnp.einsum("fbe,fed->fbd", counts, tables.astype(jnp.float32))
    return jnp.transpose(pooled, (1, 0, 2)).reshape(B, -1)


if __name__ == "__main__":
    # --- Config 1: matches the module docstring example --------------------
    #   tables t1, t2: num_embeddings=16, embedding_dim=8; f1->t1, f2->t2
    #   MC modules: max_input_id=32, max_output_id=16 (remap == id % 16)
    F, B, L, E, D = 2, 8, 8, 16, 8
    MAX_INPUT_ID = 32
    k_val, k_len, k_tbl = jax.random.split(jax.random.PRNGKey(0), 3)
    values = jax.random.randint(k_val, (F, B, L), 0, MAX_INPUT_ID, dtype=jnp.int32)
    lengths = jax.random.randint(k_len, (F, B, 1), 0, L + 1, dtype=jnp.int32)
    tables = jax.random.normal(k_tbl, (F, E, D), dtype=jnp.float32)

    out = jax.block_until_ready(mc_ebc_forward(values, lengths, tables))
    ref = ref_forward(values, lengths, tables)
    assert out.shape == (B, F * D)
    assert jnp.allclose(out, ref, atol=1e-5, rtol=1e-5), "config-1 mismatch"

    # bf16-table option (half the table DMA bytes, f32 accumulation).
    out_bf16 = jax.block_until_ready(
        mc_ebc_forward(values, lengths, tables, table_dtype=jnp.bfloat16))
    assert jnp.allclose(out_bf16, ref, atol=1e-1, rtol=2e-2), "bf16 mismatch"

    # --- Config 2: forces B/E tiling (nb=2, ne=2), padding, non-pow2 E -----
    F2, B2, L2, E2, D2 = 2, 30, 12, 200, 16
    k_val2, k_len2, k_tbl2 = jax.random.split(jax.random.PRNGKey(1), 3)
    values2 = jax.random.randint(k_val2, (F2, B2, L2), 0, 3 * E2, dtype=jnp.int32)
    lengths2 = jax.random.randint(k_len2, (F2, B2, 1), 0, L2 + 1, dtype=jnp.int32)
    tables2 = jax.random.normal(k_tbl2, (F2, E2, D2), dtype=jnp.float32)

    out2 = jax.block_until_ready(
        mc_ebc_forward(values2, lengths2, tables2, b_tile=16, e_tile=128))
    ref2 = ref_forward(values2, lengths2, tables2)
    assert out2.shape == (B2, F2 * D2)
    assert jnp.allclose(out2, ref2, atol=1e-4, rtol=1e-4), "config-2 mismatch"

    print("KERNEL_OK")
</pallas_src>

<mosaic_0001>
module attributes {stable_mosaic.version = 11 : i64} {
  func.func @_mc_ebc_kernel(%arg0: i32, %arg1: i32, %arg2: memref<2x8x8xi32, #tpu.memory_space<vmem>>, %arg3: memref<2x8x1xi32, #tpu.memory_space<vmem>>, %arg4: memref<2x16x8xf32, #tpu.memory_space<vmem>>, %arg5: memref<8x16xf32, #tpu.memory_space<vmem>>, %arg6: memref<2x8x8xi32, #tpu.memory_space<vmem>>) attributes {dimension_semantics = [#tpu.dimension_semantics<parallel>, #tpu.dimension_semantics<arbitrary>], iteration_bounds = array<i64: 1, 1>, scalar_prefetch = 0 : i64, scratch_operands = 1 : i64, tpu.core_type = #tpu.core_type<tc>, window_params = [{transform_indices = @transform_0, window_bounds = array<i64: 2, 8, 8>}, {transform_indices = @transform_1, window_bounds = array<i64: 2, 8, 1>}, {transform_indices = @transform_2, window_bounds = array<i64: 2, 16, 8>}, {transform_indices = @transform_3, window_bounds = array<i64: 8, 16>}]} {
    %c0 = arith.constant 0 : index
    %c0_0 = arith.constant 0 : index
    %c0_1 = arith.constant 0 : index
    %0 = vector.load %arg2[%c0, %c0_0, %c0_1] : memref<2x8x8xi32, #tpu.memory_space<vmem>>, vector<2x8x8xi32>
    %c0_2 = arith.constant 0 : index
    %c0_3 = arith.constant 0 : index
    %c0_4 = arith.constant 0 : index
    %1 = vector.load %arg3[%c0_2, %c0_3, %c0_4] : memref<2x8x1xi32, #tpu.memory_space<vmem>>, vector<2x8x1xi32>
    %2 = tpu.iota {dimensions = array<i32: 2>} : vector<2x8x8xi32>
    %c15_i32 = arith.constant 15 : i32
    %3 = vector.broadcast %c15_i32 : i32 to vector<2x8x8xi32>
    %4 = arith.andi %0, %3 : vector<2x8x8xi32>
    %5 = vector.broadcast %1 : vector<2x8x1xi32> to vector<2x8x8xi32>
    %6 = arith.cmpi slt, %2, %5 : vector<2x8x8xi32>
    %c-1_i32 = arith.constant -1 : i32
    %7 = vector.broadcast %c-1_i32 : i32 to vector<2x8x8xi32>
    %8 = arith.select %6, %4, %7 : vector<2x8x8xi1>, vector<2x8x8xi32>
    %9 = tpu.iota {dimensions = array<i32: 1>} : vector<8x16xi32>
    %10 = vector.extract_strided_slice %8 {offsets = [0, 0, 0], sizes = [1, 8, 8], strides = [1, 1, 1]} : vector<2x8x8xi32> to vector<1x8x8xi32>
    %11 = vector.shape_cast %10 : vector<1x8x8xi32> to vector<8x8xi32>
    %cst = arith.constant 0.000000e+00 : f32
    %12 = vector.broadcast %cst : f32 to vector<8x16xf32>
    %13 = vector.extract_strided_slice %11 {offsets = [0, 0], sizes = [8, 1], strides = [1, 1]} : vector<8x8xi32> to vector<8x1xi32>
    %14 = vector.broadcast %13 : vector<8x1xi32> to vector<8x16xi32>
    %15 = arith.cmpi eq, %14, %9 : vector<8x16xi32>
    %16 = arith.extui %15 : vector<8x16xi1> to vector<8x16xi32>
    %17 = arith.sitofp %16 : vector<8x16xi32> to vector<8x16xf32>
    %18 = arith.addf %12, %17 : vector<8x16xf32>
    %19 = vector.extract_strided_slice %11 {offsets = [0, 1], sizes = [8, 1], strides = [1, 1]} : vector<8x8xi32> to vector<8x1xi32>
    %20 = vector.broadcast %19 : vector<8x1xi32> to vector<8x16xi32>
    %21 = arith.cmpi eq, %20, %9 : vector<8x16xi32>
    %22 = arith.extui %21 : vector<8x16xi1> to vector<8x16xi32>
    %23 = arith.sitofp %22 : vector<8x16xi32> to vector<8x16xf32>
    %24 = arith.addf %18, %23 : vector<8x16xf32>
    %25 = vector.extract_strided_slice %11 {offsets = [0, 2], sizes = [8, 1], strides = [1, 1]} : vector<8x8xi32> to vector<8x1xi32>
    %26 = vector.broadcast %25 : vector<8x1xi32> to vector<8x16xi32>
    %27 = arith.cmpi eq, %26, %9 : vector<8x16xi32>
    %28 = arith.extui %27 : vector<8x16xi1> to vector<8x16xi32>
    %29 = arith.sitofp %28 : vector<8x16xi32> to vector<8x16xf32>
    %30 = arith.addf %24, %29 : vector<8x16xf32>
    %31 = vector.extract_strided_slice %11 {offsets = [0, 3], sizes = [8, 1], strides = [1, 1]} : vector<8x8xi32> to vector<8x1xi32>
    %32 = vector.broadcast %31 : vector<8x1xi32> to vector<8x16xi32>
    %33 = arith.cmpi eq, %32, %9 : vector<8x16xi32>
    %34 = arith.extui %33 : vector<8x16xi1> to vector<8x16xi32>
    %35 = arith.sitofp %34 : vector<8x16xi32> to vector<8x16xf32>
    %36 = arith.addf %30, %35 : vector<8x16xf32>
    %37 = vector.extract_strided_slice %11 {offsets = [0, 4], sizes = [8, 1], strides = [1, 1]} : vector<8x8xi32> to vector<8x1xi32>
    %38 = vector.broadcast %37 : vector<8x1xi32> to vector<8x16xi32>
    %39 = arith.cmpi eq, %38, %9 : vector<8x16xi32>
    %40 = arith.extui %39 : vector<8x16xi1> to vector<8x16xi32>
    %41 = arith.sitofp %40 : vector<8x16xi32> to vector<8x16xf32>
    %42 = arith.addf %36, %41 : vector<8x16xf32>
    %43 = vector.extract_strided_slice %11 {offsets = [0, 5], sizes = [8, 1], strides = [1, 1]} : vector<8x8xi32> to vector<8x1xi32>
    %44 = vector.broadcast %43 : vector<8x1xi32> to vector<8x16xi32>
    %45 = arith.cmpi eq, %44, %9 : vector<8x16xi32>
    %46 = arith.extui %45 : vector<8x16xi1> to vector<8x16xi32>
    %47 = arith.sitofp %46 : vector<8x16xi32> to vector<8x16xf32>
    %48 = arith.addf %42, %47 : vector<8x16xf32>
    %49 = vector.extract_strided_slice %11 {offsets = [0, 6], sizes = [8, 1], strides = [1, 1]} : vector<8x8xi32> to vector<8x1xi32>
    %50 = vector.broadcast %49 : vector<8x1xi32> to vector<8x16xi32>
    %51 = arith.cmpi eq, %50, %9 : vector<8x16xi32>
    %52 = arith.extui %51 : vector<8x16xi1> to vector<8x16xi32>
    %53 = arith.sitofp %52 : vector<8x16xi32> to vector<8x16xf32>
    %54 = arith.addf %48, %53 : vector<8x16xf32>
    %55 = vector.extract_strided_slice %11 {offsets = [0, 7], sizes = [8, 1], strides = [1, 1]} : vector<8x8xi32> to vector<8x1xi32>
    %56 = vector.broadcast %55 : vector<8x1xi32> to vector<8x16xi32>
    %57 = arith.cmpi eq, %56, %9 : vector<8x16xi32>
    %58 = arith.extui %57 : vector<8x16xi1> to vector<8x16xi32>
    %59 = arith.sitofp %58 : vector<8x16xi32> to vector<8x16xf32>
    %60 = arith.addf %54, %59 : vector<8x16xf32>
    %c0_5 = arith.constant 0 : index
    %c0_6 = arith.constant 0 : index
    %c0_7 = arith.constant 0 : index
    %61 = vector.load %arg4[%c0_5, %c0_6, %c0_7] : memref<2x16x8xf32, #tpu.memory_space<vmem>>, vector<1x16x8xf32>
    %62 = vector.shape_cast %61 : vector<1x16x8xf32> to vector<16x8xf32>
    %cst_8 = arith.constant dense<0.000000e+00> : vector<8x8xf32>
    %63 = tpu.matmul %60, %62, %cst_8 {dimension_numbers = #tpu.dot_dimension_numbers<[1], [0], [0], [1], [0, 0, 1, 1], [], []>} : vector<8x16xf32>, vector<16x8xf32>, vector<8x8xf32> -> vector<8x8xf32>
    %64 = vector.extract_strided_slice %8 {offsets = [1, 0, 0], sizes = [1, 8, 8], strides = [1, 1, 1]} : vector<2x8x8xi32> to vector<1x8x8xi32>
    %65 = vector.shape_cast %64 : vector<1x8x8xi32> to vector<8x8xi32>
    %cst_9 = arith.constant 0.000000e+00 : f32
    %66 = vector.broadcast %cst_9 : f32 to vector<8x16xf32>
    %67 = vector.extract_strided_slice %65 {offsets = [0, 0], sizes = [8, 1], strides = [1, 1]} : vector<8x8xi32> to vector<8x1xi32>
    %68 = vector.broadcast %67 : vector<8x1xi32> to vector<8x16xi32>
    %69 = arith.cmpi eq, %68, %9 : vector<8x16xi32>
    %70 = arith.extui %69 : vector<8x16xi1> to vector<8x16xi32>
    %71 = arith.sitofp %70 : vector<8x16xi32> to vector<8x16xf32>
    %72 = arith.addf %66, %71 : vector<8x16xf32>
    %73 = vector.extract_strided_slice %65 {offsets = [0, 1], sizes = [8, 1], strides = [1, 1]} : vector<8x8xi32> to vector<8x1xi32>
    %74 = vector.broadcast %73 : vector<8x1xi32> to vector<8x16xi32>
    %75 = arith.cmpi eq, %74, %9 : vector<8x16xi32>
    %76 = arith.extui %75 : vector<8x16xi1> to vector<8x16xi32>
    %77 = arith.sitofp %76 : vector<8x16xi32> to vector<8x16xf32>
    %78 = arith.addf %72, %77 : vector<8x16xf32>
    %79 = vector.extract_strided_slice %65 {offsets = [0, 2], sizes = [8, 1], strides = [1, 1]} : vector<8x8xi32> to vector<8x1xi32>
    %80 = vector.broadcast %79 : vector<8x1xi32> to vector<8x16xi32>
    %81 = arith.cmpi eq, %80, %9 : vector<8x16xi32>
    %82 = arith.extui %81 : vector<8x16xi1> to vector<8x16xi32>
    %83 = arith.sitofp %82 : vector<8x16xi32> to vector<8x16xf32>
    %84 = arith.addf %78, %83 : vector<8x16xf32>
    %85 = vector.extract_strided_slice %65 {offsets = [0, 3], sizes = [8, 1], strides = [1, 1]} : vector<8x8xi32> to vector<8x1xi32>
    %86 = vector.broadcast %85 : vector<8x1xi32> to vector<8x16xi32>
    %87 = arith.cmpi eq, %86, %9 : vector<8x16xi32>
    %88 = arith.extui %87 : vector<8x16xi1> to vector<8x16xi32>
    %89 = arith.sitofp %88 : vector<8x16xi32> to vector<8x16xf32>
    %90 = arith.addf %84, %89 : vector<8x16xf32>
    %91 = vector.extract_strided_slice %65 {offsets = [0, 4], sizes = [8, 1], strides = [1, 1]} : vector<8x8xi32> to vector<8x1xi32>
    %92 = vector.broadcast %91 : vector<8x1xi32> to vector<8x16xi32>
    %93 = arith.cmpi eq, %92, %9 : vector<8x16xi32>
    %94 = arith.extui %93 : vector<8x16xi1> to vector<8x16xi32>
    %95 = arith.sitofp %94 : vector<8x16xi32> to vector<8x16xf32>
    %96 = arith.addf %90, %95 : vector<8x16xf32>
    %97 = vector.extract_strided_slice %65 {offsets = [0, 5], sizes = [8, 1], strides = [1, 1]} : vector<8x8xi32> to vector<8x1xi32>
    %98 = vector.broadcast %97 : vector<8x1xi32> to vector<8x16xi32>
    %99 = arith.cmpi eq, %98, %9 : vector<8x16xi32>
    %100 = arith.extui %99 : vector<8x16xi1> to vector<8x16xi32>
    %101 = arith.sitofp %100 : vector<8x16xi32> to vector<8x16xf32>
    %102 = arith.addf %96, %101 : vector<8x16xf32>
    %103 = vector.extract_strided_slice %65 {offsets = [0, 6], sizes = [8, 1], strides = [1, 1]} : vector<8x8xi32> to vector<8x1xi32>
    %104 = vector.broadcast %103 : vector<8x1xi32> to vector<8x16xi32>
    %105 = arith.cmpi eq, %104, %9 : vector<8x16xi32>
    %106 = arith.extui %105 : vector<8x16xi1> to vector<8x16xi32>
    %107 = arith.sitofp %106 : vector<8x16xi32> to vector<8x16xf32>
    %108 = arith.addf %102, %107 : vector<8x16xf32>
    %109 = vector.extract_strided_slice %65 {offsets = [0, 7], sizes = [8, 1], strides = [1, 1]} : vector<8x8xi32> to vector<8x1xi32>
    %110 = vector.broadcast %109 : vector<8x1xi32> to vector<8x16xi32>
    %111 = arith.cmpi eq, %110, %9 : vector<8x16xi32>
    %112 = arith.extui %111 : vector<8x16xi1> to vector<8x16xi32>
    %113 = arith.sitofp %112 : vector<8x16xi32> to vector<8x16xf32>
    %114 = arith.addf %108, %113 : vector<8x16xf32>
    %c1 = arith.constant 1 : index
    %c0_10 = arith.constant 0 : index
    %c0_11 = arith.constant 0 : index
    %115 = vector.load %arg4[%c1, %c0_10, %c0_11] : memref<2x16x8xf32, #tpu.memory_space<vmem>>, vector<1x16x8xf32>
    %116 = vector.shape_cast %115 : vector<1x16x8xf32> to vector<16x8xf32>
    %cst_12 = arith.constant dense<0.000000e+00> : vector<8x8xf32>
    %117 = tpu.matmul %114, %116, %cst_12 {dimension_numbers = #tpu.dot_dimension_numbers<[1], [0], [0], [1], [0, 0, 1, 1], [], []>} : vector<8x16xf32>, vector<16x8xf32>, vector<8x8xf32> -> vector<8x8xf32>
    %118 = tpu.concatenate %63, %117 in 1 : vector<8x8xf32>, vector<8x8xf32> -> vector<8x16xf32>
    %c0_13 = arith.constant 0 : index
    %c0_14 = arith.constant 0 : index
    %119 = vector.load %arg5[%c0_13, %c0_14] : memref<8x16xf32, #tpu.memory_space<vmem>>, vector<8x16xf32>
    tpu.vector_store %arg5[%c0_13, %c0_14], %118 {strides = array<i32>} : memref<8x16xf32, #tpu.memory_space<vmem>>, vector<8x16xf32>,
    return
  }
  func.func @transform_0(%arg0: i32, %arg1: i32) -> (i32, i32, i32) {
    %c0_i32 = arith.constant 0 : i32
    %c0_i32_0 = arith.constant 0 : i32
    %c0_i32_1 = arith.constant 0 : i32
    return %c0_i32, %arg0, %c0_i32_0 : i32, i32, i32
  }
  func.func @transform_1(%arg0: i32, %arg1: i32) -> (i32, i32, i32) {
    %c0_i32 = arith.constant 0 : i32
    %c0_i32_0 = arith.constant 0 : i32
    %c0_i32_1 = arith.constant 0 : i32
    return %c0_i32, %arg0, %c0_i32_0 : i32, i32, i32
  }
  func.func @transform_2(%arg0: i32, %arg1: i32) -> (i32, i32, i32) {
    %c0_i32 = arith.constant 0 : i32
    %c0_i32_0 = arith.constant 0 : i32
    %c0_i32_1 = arith.constant 0 : i32
    return %c0_i32, %arg1, %c0_i32_0 : i32, i32, i32
  }
  func.func @transform_3(%arg0: i32, %arg1: i32) -> (i32, i32) {
    %c0_i32 = arith.constant 0 : i32
    %c0_i32_0 = arith.constant 0 : i32
    return %arg0, %c0_i32 : i32, i32
  }
}

</mosaic_0001>

<bundles_post_ra>
// kernel: tpu_custom_call.1
= control target key start
LH: loop header
LB: loop body
LE: loop exit
PB: predicated region body
PF: predicated region fallthrough
CT: control target
= control target key end

     0   :  { %v419_v1 = vmov 0   ;;  %s529_s0 = inlined_call_operand.vmem [shape: s32[2,8,8], index: 0, kind: input, shape index: {}]   ;;  %s530_s1 = inlined_call_operand.vmem [shape: s32[2,8,1], index: 1, kind: input, shape index: {}]   ;;  %s531_s2 = inlined_call_operand.vmem [shape: f32[2,16,8], index: 2, kind: input, shape index: {}]   ;;  %s532_s3 = inlined_call_operand.hbm [shape: f32[8,16], index: 3, kind: output, shape index: {}]  }
   0x1   :  { %v18_v0 = vld [vmem:[%s530_s1 + $0x8] sm:$0xff]  ;;  %377 = vset.pattern.permute.xlu0 %v419_v1  ;;  %378 = vset.pattern.permute.xlu1 %v419_v1 }
   0x2   :  { %8 = vsyncpa [#allocation4], 0  ;;  %27 = vperm.xlu0 %377, %v18_v0   ;;  %v17_v2 = vld [vmem:[%s530_s1] sm:$0xff]  ;;  %v420_v3 = vmov 2   ;;  %v19_v4 = vlaneseq  ;;  %v16_v5 = vld [vmem:[%s529_s0 + $0x8] sm:$0xff]  ;;  %v421_v12 = vmov 5  }
   0x3   :  { %v22_v7 = vand.u32 15, %v16_v5  ;;  %v15_v10 = vld [vmem:[%s529_s0] sm:$0xff]  ;;  %v422_v13 = vmov 1   ;;  %v423_v16 = vmov 3   ;;  %v424_v17 = vmov 4   ;;  %v335_v19 = vld [vmem:[%s531_s2 + $0x10] sm:$0xff] }
   0x4   :  { %v461_v6 = vand.u32 127, %v19_v4  ;;  %v21_v14 = vand.u32 15, %v15_v10  ;;  %v425_v18 = vmov 6   ;;  %v336_v20 = vld [vmem:[%s531_s2 + $0x18] sm:$0xff]  ;;  %v426_v21 = vmov 7   ;;  %v89_v25 = vld [vmem:[%s531_s2] sm:$0xff] }
   0x5   :  { %v362_v22 = vpack.c.bf16 %v336_v20, %v335_v19  ;;  %v427_v23 = vmov 0.0|0.0   ;;  %vm428_vm2 = vmmov 0   ;;  %v429_v24 = vmov 0.0   ;;  %v90_v26 = vld [vmem:[%s531_s2 + $0x8] sm:$0xff]  ;;  %s430_s2 = smov 8   ;;  %s431_s26 = smov [#allocation3]  }
   0x6   :  { %24 = vperm.xlu0 %377, %v17_v2   ;;  %361 = vmatprep.subr.bf16.mxu1 %v427_v23  ;;  %v359_v27 = vpack.c.bf16 %v90_v26, %v89_v25  ;;  %vm91_vm11 = vcmask 130048   ;;  %s310_s27 = sshll.u32 %s431_s26, 4  ;;  %s311_s27 = int_to_ptr.vmem [resolvable:$true] %s310_s27 }
   0x7   :  { %363 = vmatpush3.bf16.msra.mxu1 %v362_v22  ;;  %358 = vmatprep.subr.bf16.mxu0 %v427_v23  ;;  %s395_s28 = scalar_lea.vmem %s311_s27, 128  ;;  %p400_p1 = scmp.lt.s32.totalorder %s311_s27, %s311_s27 }
   0x8   :  { %355 = vmatprep.mubr.msk.f32.mxu1 %vm428_vm2, %v429_v24  ;;  %348 = vmatprep.mubr.msk.f32.mxu0 %vm428_vm2, %v429_v24  ;;  %p396_p0 = scmp.ne.s32.totalorder %s311_s27, %s395_s28  ;;  %p401_p2 = scmp.lt.s32.totalorder %s395_s28, %s395_s28 }
   0x9   :  { %360 = vmatpush3.bf16.msra.mxu0 %v359_v27 }
   0xa   :  { %380 = vset.pattern.permute.xlu0 %v420_v3  ;;  %p402_p3 = por %p401_p2, %p400_p1 }
   0xc   :  { %p403_p4 = pnand %p402_p3, %p396_p0 }
  0x81   :  { %v28_v8 = vpop.permute.xlu0 %27 }
  0x82   :  { %vm30_vm0 = vcmp.lt.s32.totalorder %v461_v6, %v28_v8 }
  0x83   :  { %v32_v9 = vsel %vm30_vm0, %v22_v7, 4294967295 }
  0x84   :  { %180 = vperm.xlu0 %380, %v32_v9   ;;  %166 = vperm.xlu1 %378, %v32_v9  }
  0x85   :  { %v25_v11 = vpop.permute.xlu0 %24 }
  0x86   :  { %vm29_vm1 = vcmp.lt.s32.totalorder %v461_v6, %v25_v11 }
  0x87   :  { %v31_v15 = vsel %vm29_vm1, %v21_v14, 4294967295 }
  0x88   :  { %383 = vset.pattern.permute.xlu0 %v421_v12  ;;  %379 = vset.pattern.permute.xlu1 %v422_v13 }
  0x89   :  { %201 = vperm.xlu0 %383, %v32_v9   ;;  %173 = vperm.xlu1 %379, %v32_v9  }
  0x8d   :  { %386 = vset.pattern.permute.xlu0 %v419_v1  ;;  %381 = vset.pattern.permute.xlu1 %v423_v16 }
  0x8e   :  { %187 = vperm.xlu1 %381, %v32_v9   ;;  %34 = vperm.xlu0 %386, %v31_v15  }
  0x92   :  { %382 = vset.pattern.permute.xlu1 %v424_v17  ;;  %389 = vset.pattern.permute.xlu0 %v423_v16 }
  0x93   :  { %194 = vperm.xlu1 %382, %v32_v9   ;;  %55 = vperm.xlu0 %389, %v31_v15  }
  0x97   :  { %384 = vset.pattern.permute.xlu1 %v425_v18  ;;  %392 = vset.pattern.permute.xlu0 %v425_v18 }
  0x98   :  { %208 = vperm.xlu1 %384, %v32_v9   ;;  %76 = vperm.xlu0 %392, %v31_v15  }
  0x9c   :  { %385 = vset.pattern.permute.xlu1 %v426_v21  ;;  %394 = vset.pattern.permute.xlu0 %v426_v21 }
  0x9d   :  { %215 = vperm.xlu1 %385, %v32_v9  }
  0xa1   :  { %387 = vset.pattern.permute.xlu1 %v422_v13 }
  0xa2   :  { %41 = vperm.xlu1 %387, %v31_v15  }
  0xa6   :  { %388 = vset.pattern.permute.xlu1 %v420_v3 }
  0xa7   :  { %48 = vperm.xlu1 %388, %v31_v15  }
  0xab   :  { %390 = vset.pattern.permute.xlu1 %v424_v17 }
  0xac   :  { %62 = vperm.xlu1 %390, %v31_v15  }
  0xb0   :  { %391 = vset.pattern.permute.xlu1 %v421_v12 }
  0xb1   :  { %69 = vperm.xlu1 %391, %v31_v15  }
  0xb5   :  { %393 = vset.pattern.permute.xlu1 %v426_v21 }
  0xb6   :  { %83 = vperm.xlu1 %393, %v31_v15  }
 0x103   :  { %v167_v28 = vpop.permute.xlu1 %166  ;;  %v181_v29 = vpop.permute.xlu0 %180 }
 0x104   :  { %vm168_vm3 = vcmp.eq.s32.totalorder %v167_v28, %v461_v6  ;;  %vm182_vm5 = vcmp.eq.s32.totalorder %v181_v29, %v461_v6 }
 0x105   :  { %v327_v31 = vsel %vm168_vm3, 1.0, %v429_v24  ;;  %v329_v35 = vsel %vm182_vm5, 1.0, %v429_v24 }
 0x108   :  { %v174_v30 = vpop.permute.xlu1 %173  ;;  %v202_v38 = vpop.permute.xlu0 %201 }
 0x109   :  { %vm175_vm4 = vcmp.eq.s32.totalorder %v174_v30, %v461_v6  ;;  %vm203_vm8 = vcmp.eq.s32.totalorder %v202_v38, %v461_v6 }
 0x10a   :  { %v328_v32 = vsel %vm175_vm4, 1.0, %v429_v24  ;;  %v332_v44 = vsel %vm203_vm8, 1.0, %v429_v24  ;;  %vm301_vm4 = vcmask 64512  }
 0x10b   :  { %v178_v33 = vadd.f32 %v328_v32, %v327_v31 }
 0x10d   :  { %v188_v34 = vpop.permute.xlu1 %187  ;;  %v185_v36 = vadd.f32 %v329_v35, %v178_v33  ;;  %v35_v51 = vpop.permute.xlu0 %34 }
 0x10e   :  { %vm189_vm6 = vcmp.eq.s32.totalorder %v188_v34, %v461_v6  ;;  %vm36_vm13 = vcmp.eq.s32.totalorder %v35_v51, %v461_v6 }
 0x10f   :  { %v330_v37 = vsel %vm189_vm6, 1.0, %v429_v24  ;;  %v318_v54 = vsel %vm36_vm13, 1.0, %v429_v24 }
 0x110   :  { %v192_v40 = vadd.f32 %v330_v37, %v185_v36 }
 0x112   :  { %v195_v39 = vpop.permute.xlu1 %194  ;;  %v56_v55 = vpop.permute.xlu0 %55 }
 0x113   :  { %vm196_vm7 = vcmp.eq.s32.totalorder %v195_v39, %v461_v6  ;;  %vm57_vm15 = vcmp.eq.s32.totalorder %v56_v55, %v461_v6 }
 0x114   :  { %v331_v41 = vsel %vm196_vm7, 1.0, %v429_v24  ;;  %v321_v61 = vsel %vm57_vm15, 1.0, %v429_v24 }
 0x115   :  { %v199_v42 = vadd.f32 %v331_v41, %v192_v40 }
 0x117   :  { %v209_v43 = vpop.permute.xlu1 %208  ;;  %v206_v45 = vadd.f32 %v332_v44, %v199_v42  ;;  %v77_v63 = vpop.permute.xlu0 %76 }
 0x118   :  { %vm210_vm9 = vcmp.eq.s32.totalorder %v209_v43, %v461_v6  ;;  %vm78_vm1 = vcmp.eq.s32.totalorder %v77_v63, %v461_v6 }
 0x119   :  { %v333_v46 = vsel %vm210_vm9, 1.0, %v429_v24  ;;  %v324_v5 = vsel %vm78_vm1, 1.0, %v429_v24 }
 0x11a   :  { %v213_v48 = vadd.f32 %v333_v46, %v206_v45 }
 0x11c   :  { %v216_v47 = vpop.permute.xlu1 %215 }
 0x11d   :  { %vm217_vm10 = vcmp.eq.s32.totalorder %v216_v47, %v461_v6 }
 0x11e   :  { %v334_v49 = vsel %vm217_vm10, 1.0, %v429_v24 }
 0x11f   :  { %v220_v50 = vadd.f32 %v334_v49, %v213_v48 }
 0x121   :  { %356 = vmatmul.mubr.msk.f32.vlgmr.msra.gmra.mrb[0].mxu1 %vm91_vm11, %v220_v50  ;;  %v42_v52 = vpop.permute.xlu1 %41 }
 0x122   :  { %vm43_vm12 = vcmp.eq.s32.totalorder %v42_v52, %v461_v6 }
 0x123   :  { %v319_v53 = vsel %vm43_vm12, 1.0, %v429_v24 }
 0x124   :  { %v46_v57 = vadd.f32 %v319_v53, %v318_v54 }
 0x126   :  { %v49_v56 = vpop.permute.xlu1 %48 }
 0x127   :  { %vm50_vm14 = vcmp.eq.s32.totalorder %v49_v56, %v461_v6 }
 0x128   :  { %v320_v58 = vsel %vm50_vm14, 1.0, %v429_v24 }
 0x129   :  { %v53_v59 = vadd.f32 %v320_v58, %v46_v57 }
 0x12b   :  { %v63_v60 = vpop.permute.xlu1 %62  ;;  %v60_v62 = vadd.f32 %v321_v61, %v53_v59 }
 0x12c   :  { %vm64_vm0 = vcmp.eq.s32.totalorder %v63_v60, %v461_v6 }
 0x12d   :  { %v322_v0 = vsel %vm64_vm0, 1.0, %v429_v24 }
 0x12e   :  { %v67_v2 = vadd.f32 %v322_v0, %v60_v62 }
 0x130   :  { %v70_v1 = vpop.permute.xlu1 %69 }
 0x131   :  { %vm71_vm2 = vcmp.eq.s32.totalorder %v70_v1, %v461_v6 }
 0x132   :  { %v323_v3 = vsel %vm71_vm2, 1.0, %v429_v24 }
 0x133   :  { %v74_v4 = vadd.f32 %v323_v3, %v67_v2 }
 0x135   :  { %v84_v7 = vpop.permute.xlu1 %83  ;;  %v81_v8 = vadd.f32 %v324_v5, %v74_v4 }
 0x136   :  { %vm85_vm3 = vcmp.eq.s32.totalorder %v84_v7, %v461_v6 }
 0x137   :  { %v325_v9 = vsel %vm85_vm3, 1.0, %v429_v24 }
 0x138   :  { %v88_v10 = vadd.f32 %v325_v9, %v81_v8 }
 0x13a   :  { %349 = vmatmul.mubr.msk.f32.vlgmr.msra.gmra.mrb[0].mxu0 %vm91_vm11, %v88_v10 }
 0x1f4   :  { %v293_v11 = vpop.f32.mrb[0].mxu1 }
 0x1f5   :  { %v357_v12 = vpop.f32.mrb[1].mxu1  ;;  %298 = vrot.lane.b32.xlu1 %v293_v11, %s430_s2 }
 0x20d   :  { %v161_v13 = vpop.f32.mrb[0].mxu0 }
 0x20e   :  { %v350_v14 = vpop.f32.mrb[1].mxu0 }
 0x267   :  { %v299_v15 = vpop.permute.xlu1 %298 }
 0x268   :  { %v302_v16 = vsel %vm301_vm4, %v161_v13, %v299_v15 }
 0x269   :  { %303 = vst.msk [vmem:[#allocation3] sm:$0xff] %vm91_vm11, %v302_v16 }
 0x26a   :  { %406 = shalt.err (!%p403_p4)
}
 0x26b   :  { %s407_s4 = scalar_lea.hbm %s532_s3, 128 }
 0x26c   :  { %p408_p5 = scmp.ne.s32.totalorder %s532_s3, %s407_s4  ;;  %p411_p6 = scmp.lt.u32.totalorder %s407_s4, %s532_s3 }
 0x26e   :  { %p413_p7 = pnand %p411_p6, %p408_p5 }
 0x270   :  { %416 = shalt.err (!%p413_p7)
}
 0x271   :  { %313 = dma.vmem_to_hbm [thread:$0]  %s311_s27, 128, %s532_s3, [#allocation4]  }
 0x272   :  { %417 = dma.done.wait [#allocation4], 128  }
 0x273   :  { %418 = vsyncadd [#allocation4], 4294967168 }
 0x274   :  { %317 = vsyncpa [#allocation4], 1 }

</bundles_post_ra>
